<compile_context>
chip_gen: v7x
topology: tpu7x:2x2x1
jax: 0.10.0
libtpu: 0.0.40
codegen_flags: <defaults>
</compile_context>

<pallas_src>
import functools

import numpy as np
import jax
import jax.numpy as jnp
from jax import lax
from jax.experimental import pallas as pl
from jax.experimental.pallas import tpu as pltpu

LANE = 128
SUBLANE = 8
EPS = 1e-10


def _stats_kernel(gb_ref, x_ref, stats_ref,
                  acc_sx, acc_sxx, acc_cnt, acc_s1, acc_s2, sm_ref,
                  *, n_total, thres, block_rows, needs_mask):
    """grid = (2, nblocks).  Phase 0: global sufficient stats.  Phase 1: pruned stats.

    Writes a (8,128) f32 slab: row 0 = scale (broadcast), row 1 = shift (broadcast).
    """
    p = pl.program_id(0)
    b = pl.program_id(1)
    nb = pl.num_programs(1)
    eps = jnp.float32(EPS)

    # -------- phase 0: sum(x), sum(x^2) with (1,128) per-lane partials --------
    @pl.when(p == 0)
    def _phase0():
        @pl.when(b == 0)
        def _init():
            for a in (acc_sx, acc_sxx, acc_cnt, acc_s1, acc_s2):
                a[...] = jnp.zeros_like(a)

        xb = x_ref[...].astype(jnp.float32)
        acc_sx[...] += jnp.sum(xb, axis=0, keepdims=True)
        acc_sxx[...] += jnp.sum(xb * xb, axis=0, keepdims=True)
        # Padding (zeros) contributes nothing to either sum; n_total is exact.

        @pl.when(b == nb - 1)
        def _finalize0():
            n = jnp.float32(n_total)
            sx = jnp.sum(acc_sx[...])
            sxx = jnp.sum(acc_sxx[...])
            mean = sx / n
            var = (sxx - n * mean * mean) / (n - 1.0)      # unbiased
            sm_ref[0] = mean
            # scalar selection bound: |x - mean| < thres * sqrt(var + eps)
            sm_ref[1] = jnp.float32(thres) * jnp.sqrt(var + eps)

    # -------- phase 1: pruned stats, centered at the global mean --------
    @pl.when(p == 1)
    def _phase1():
        xb = x_ref[...].astype(jnp.float32)
        mean = sm_ref[0]
        bound = sm_ref[1]
        xc = xb - mean
        sel = jnp.abs(xc) < bound
        if needs_mask:
            # Padding only exists in the tail; cheap row/col compare, no flat index mul.
            grow = b * block_rows + lax.broadcasted_iota(jnp.int32, xb.shape, 0)
            col = lax.broadcasted_iota(jnp.int32, xb.shape, 1)
            full_rows = n_total // LANE
            rem = n_total % LANE
            valid = (grow < full_rows) | ((grow == full_rows) & (col < rem))
            sel = sel & valid
        selc = sel.astype(jnp.float32)
        w = xc * selc
        acc_cnt[...] += jnp.sum(selc, axis=0, keepdims=True)
        acc_s1[...] += jnp.sum(w, axis=0, keepdims=True)
        acc_s2[...] += jnp.sum(xc * w, axis=0, keepdims=True)

        @pl.when(b == nb - 1)
        def _finalize1():
            gamma = gb_ref[0]
            beta = gb_ref[1]
            cnt = jnp.sum(acc_cnt[...])
            d = jnp.sum(acc_s1[...]) / cnt                  # pruned_mean - mean
            # sum((x - pruned_mean)^2 * sel) = sum(xc^2*sel) - cnt*d^2  (shift identity)
            pvar = (jnp.sum(acc_s2[...]) - cnt * d * d) / (cnt - 1.0)
            scale = gamma / jnp.sqrt(pvar + eps)
            pmean = sm_ref[0] + d
            shift = beta - pmean * scale
            r = lax.broadcasted_iota(jnp.int32, stats_ref.shape, 0)
            stats_ref[...] = jnp.where(r == 0, scale,
                                       jnp.where(r == 1, shift, 0.0))


def _apply_kernel(stats_ref, x_ref, o_ref):
    """grid = (nblocks,), 'parallel'.  One FMA per element."""
    xb = x_ref[...].astype(jnp.float32)
    scale = stats_ref[0:1, :]   # (1,128), every lane holds the same value
    shift = stats_ref[1:2, :]
    o_ref[...] = (xb * scale + shift).astype(o_ref.dtype)


def bn1d_filtered(xorig, gamma, beta, thres=4.0):
    orig_shape = xorig.shape
    orig_dtype = xorig.dtype
    x_flat = xorig.reshape(-1)
    n_total = int(x_flat.shape[0])

    rows_needed = -(-n_total // LANE)
    block_rows = 512                                   # 512*128*4B = 256 KiB / block
    if rows_needed <= block_rows:
        block_rows = max(SUBLANE, -(-rows_needed // SUBLANE) * SUBLANE)
    rows_padded = -(-rows_needed // block_rows) * block_rows
    nblocks = rows_padded // block_rows
    padded_total = rows_padded * LANE
    needs_mask = padded_total != n_total

    # Exact-fit reshape when possible (no pad buffer / output slice copies).
    if needs_mask:
        x2d = jnp.pad(x_flat, (0, padded_total - n_total)).reshape(rows_padded, LANE)
    else:
        x2d = x_flat.reshape(rows_padded, LANE)

    gb = jnp.concatenate([jnp.asarray(gamma, jnp.float32).reshape(1),
                          jnp.asarray(beta, jnp.float32).reshape(1)])

    vmem_cap = 16 * 1024 * 1024  # safe on v5e/v6e/v7x; tiles use ~1 MiB

    # ---- call A: statistics (both axes carry scratch state -> "arbitrary") ----
    stats = pl.pallas_call(
        functools.partial(_stats_kernel, n_total=n_total, thres=float(thres),
                          block_rows=block_rows, needs_mask=needs_mask),
        out_shape=jax.ShapeDtypeStruct((SUBLANE, LANE), jnp.float32),
        grid=(2, nblocks),
        in_specs=[
            pl.BlockSpec(memory_space=pltpu.MemorySpace.SMEM),          # [gamma, beta]
            pl.BlockSpec((block_rows, LANE), lambda p, b: (b, 0)),      # x tiles
        ],
        out_specs=pl.BlockSpec((SUBLANE, LANE), lambda p, b: (0, 0)),
        scratch_shapes=[pltpu.VMEM((1, LANE), jnp.float32)] * 5
                       + [pltpu.SMEM((2,), jnp.float32)],
        compiler_params=pltpu.CompilerParams(
            dimension_semantics=("arbitrary", "arbitrary"),
            vmem_limit_bytes=vmem_cap),
    )(gb, x2d)

    # ---- call B: elementwise scale/shift ("parallel" -> megacore on v7x) ----
    out2d = pl.pallas_call(
        _apply_kernel,
        out_shape=jax.ShapeDtypeStruct((rows_padded, LANE), orig_dtype),
        grid=(nblocks,),
        in_specs=[
            pl.BlockSpec((SUBLANE, LANE), lambda b: (0, 0)),            # scale/shift slab
            pl.BlockSpec((block_rows, LANE), lambda b: (b, 0)),         # x tiles
        ],
        out_specs=pl.BlockSpec((block_rows, LANE), lambda b: (b, 0)),
        compiler_params=pltpu.CompilerParams(
            dimension_semantics=("parallel",),
            vmem_limit_bytes=vmem_cap),
    )(stats, x2d)

    if needs_mask:
        return out2d.reshape(-1)[:n_total].reshape(orig_shape)
    return out2d.reshape(orig_shape)


def _reference_numpy(xorig, gamma, beta, thres):
    xnp = np.asarray(xorig, dtype=np.float32)
    xf = xnp.reshape(-1).astype(np.float64)
    mean = xf.mean()
    var = xf.var(ddof=1)
    normalized = (xf - mean) / np.sqrt(var + EPS)
    sel = (normalized < thres) & (normalized > -thres)
    px = xf[sel]
    pmean = px.mean()
    pvar = px.var(ddof=1)
    return gamma * (xnp.astype(np.float64) - pmean) / np.sqrt(pvar + EPS) + beta


if __name__ == "__main__":
    key = jax.random.PRNGKey(0)
    # Input consistent with an NCHW activation tensor: batch=2, channels=4, 16x16.
    xorig = jax.random.normal(key, (2, 4, 16, 16), dtype=jnp.float32) * 2.0 + 0.5

    # Module __init__: beta = 0.0, gamma = 1.0, Thres = 4.0 (deterministic).
    gamma = 1.0
    beta = 0.0
    thres = 4.0

    out = bn1d_filtered(xorig, gamma, beta, thres)
    out = jax.block_until_ready(out)

    ref = _reference_numpy(xorig, gamma, beta, thres)
    assert out.shape == xorig.shape and out.dtype == jnp.float32
    np.testing.assert_allclose(np.asarray(out), ref, rtol=1e-4, atol=1e-4)

    print("KERNEL_OK")
</pallas_src>

<mosaic_0001>
module attributes {stable_mosaic.version = 11 : i64} {
  func.func @_stats_kernel(%arg0: i32, %arg1: i32, %arg2: memref<2xf32, #tpu.memory_space<smem>>, %arg3: memref<16x128xf32, #tpu.memory_space<vmem>>, %arg4: memref<8x128xf32, #tpu.memory_space<vmem>>, %arg5: memref<1x128xf32, #tpu.memory_space<vmem>>, %arg6: memref<1x128xf32, #tpu.memory_space<vmem>>, %arg7: memref<1x128xf32, #tpu.memory_space<vmem>>, %arg8: memref<1x128xf32, #tpu.memory_space<vmem>>, %arg9: memref<1x128xf32, #tpu.memory_space<vmem>>, %arg10: memref<2xf32, #tpu.memory_space<smem>>) attributes {dimension_semantics = [#tpu.dimension_semantics<arbitrary>, #tpu.dimension_semantics<arbitrary>], iteration_bounds = array<i64: 2, 1>, scalar_prefetch = 0 : i64, scratch_operands = 6 : i64, tpu.core_type = #tpu.core_type<tc>, window_params = [{transform_indices = @transform_0, window_bounds = array<i64: 2>}, {transform_indices = @transform_1, window_bounds = array<i64: 16, 128>}, {pipeline_mode = #tpu.pipeline_mode<synchronous>, transform_indices = @transform_2, window_bounds = array<i64: 8, 128>}]} {
    %c0_i32 = arith.constant 0 : i32
    %0 = arith.cmpi eq, %arg0, %c0_i32 : i32
    %1 = arith.extui %0 : i1 to i32
    %cst = arith.constant 1.000000e-10 : f32
    %c0_i32_0 = arith.constant 0 : i32
    %2 = arith.cmpi ne, %1, %c0_i32_0 : i32
    scf.if %2 {
      %c0_i32_3 = arith.constant 0 : i32
      %6 = arith.cmpi eq, %arg1, %c0_i32_3 : i32
      %7 = arith.extui %6 : i1 to i32
      %c0_i32_4 = arith.constant 0 : i32
      %8 = arith.cmpi ne, %7, %c0_i32_4 : i32
      scf.if %8 {
        %cst_18 = arith.constant 0.000000e+00 : f32
        %24 = vector.broadcast %cst_18 : f32 to vector<1x128xf32>
        %c0_19 = arith.constant 0 : index
        %c0_20 = arith.constant 0 : index
        %25 = vector.load %arg5[%c0_19, %c0_20] : memref<1x128xf32, #tpu.memory_space<vmem>>, vector<1x128xf32>
        tpu.vector_store %arg5[%c0_19, %c0_20], %24 {strides = array<i32>} : memref<1x128xf32, #tpu.memory_space<vmem>>, vector<1x128xf32>,
        %cst_21 = arith.constant 0.000000e+00 : f32
        %26 = vector.broadcast %cst_21 : f32 to vector<1x128xf32>
        %c0_22 = arith.constant 0 : index
        %c0_23 = arith.constant 0 : index
        %27 = vector.load %arg6[%c0_22, %c0_23] : memref<1x128xf32, #tpu.memory_space<vmem>>, vector<1x128xf32>
        tpu.vector_store %arg6[%c0_22, %c0_23], %26 {strides = array<i32>} : memref<1x128xf32, #tpu.memory_space<vmem>>, vector<1x128xf32>,
        %cst_24 = arith.constant 0.000000e+00 : f32
        %28 = vector.broadcast %cst_24 : f32 to vector<1x128xf32>
        %c0_25 = arith.constant 0 : index
        %c0_26 = arith.constant 0 : index
        %29 = vector.load %arg7[%c0_25, %c0_26] : memref<1x128xf32, #tpu.memory_space<vmem>>, vector<1x128xf32>
        tpu.vector_store %arg7[%c0_25, %c0_26], %28 {strides = array<i32>} : memref<1x128xf32, #tpu.memory_space<vmem>>, vector<1x128xf32>,
        %cst_27 = arith.constant 0.000000e+00 : f32
        %30 = vector.broadcast %cst_27 : f32 to vector<1x128xf32>
        %c0_28 = arith.constant 0 : index
        %c0_29 = arith.constant 0 : index
        %31 = vector.load %arg8[%c0_28, %c0_29] : memref<1x128xf32, #tpu.memory_space<vmem>>, vector<1x128xf32>
        tpu.vector_store %arg8[%c0_28, %c0_29], %30 {strides = array<i32>} : memref<1x128xf32, #tpu.memory_space<vmem>>, vector<1x128xf32>,
        %cst_30 = arith.constant 0.000000e+00 : f32
        %32 = vector.broadcast %cst_30 : f32 to vector<1x128xf32>
        %c0_31 = arith.constant 0 : index
        %c0_32 = arith.constant 0 : index
        %33 = vector.load %arg9[%c0_31, %c0_32] : memref<1x128xf32, #tpu.memory_space<vmem>>, vector<1x128xf32>
        tpu.vector_store %arg9[%c0_31, %c0_32], %32 {strides = array<i32>} : memref<1x128xf32, #tpu.memory_space<vmem>>, vector<1x128xf32>,
      } else {
      }
      %c0 = arith.constant 0 : index
      %c0_5 = arith.constant 0 : index
      %9 = vector.load %arg3[%c0, %c0_5] : memref<16x128xf32, #tpu.memory_space<vmem>>, vector<16x128xf32>
      %c0_6 = arith.constant 0 : index
      %c0_7 = arith.constant 0 : index
      %10 = vector.load %arg5[%c0_6, %c0_7] : memref<1x128xf32, #tpu.memory_space<vmem>>, vector<1x128xf32>
      %cst_8 = arith.constant dense<0.000000e+00> : vector<128xf32>
      %11 = vector.multi_reduction <add>, %9, %cst_8 [0] : vector<16x128xf32> to vector<128xf32>
      %12 = vector.shape_cast %11 : vector<128xf32> to vector<1x128xf32>
      %13 = arith.addf %10, %12 : vector<1x128xf32>
      %c0_9 = arith.constant 0 : index
      %c0_10 = arith.constant 0 : index
      %14 = vector.load %arg5[%c0_9, %c0_10] : memref<1x128xf32, #tpu.memory_space<vmem>>, vector<1x128xf32>
      tpu.vector_store %arg5[%c0_9, %c0_10], %13 {strides = array<i32>} : memref<1x128xf32, #tpu.memory_space<vmem>>, vector<1x128xf32>,
      %c0_11 = arith.constant 0 : index
      %c0_12 = arith.constant 0 : index
      %15 = vector.load %arg6[%c0_11, %c0_12] : memref<1x128xf32, #tpu.memory_space<vmem>>, vector<1x128xf32>
      %16 = arith.mulf %9, %9 : vector<16x128xf32>
      %cst_13 = arith.constant dense<0.000000e+00> : vector<128xf32>
      %17 = vector.multi_reduction <add>, %16, %cst_13 [0] : vector<16x128xf32> to vector<128xf32>
      %18 = vector.shape_cast %17 : vector<128xf32> to vector<1x128xf32>
      %19 = arith.addf %15, %18 : vector<1x128xf32>
      %c0_14 = arith.constant 0 : index
      %c0_15 = arith.constant 0 : index
      %20 = vector.load %arg6[%c0_14, %c0_15] : memref<1x128xf32, #tpu.memory_space<vmem>>, vector<1x128xf32>
      tpu.vector_store %arg6[%c0_14, %c0_15], %19 {strides = array<i32>} : memref<1x128xf32, #tpu.memory_space<vmem>>, vector<1x128xf32>,
      %c0_i32_16 = arith.constant 0 : i32
      %21 = arith.cmpi eq, %arg1, %c0_i32_16 : i32
      %22 = arith.extui %21 : i1 to i32
      %c0_i32_17 = arith.constant 0 : i32
      %23 = arith.cmpi ne, %22, %c0_i32_17 : i32
      scf.if %23 {
        %c0_18 = arith.constant 0 : index
        %c0_19 = arith.constant 0 : index
        %24 = vector.load %arg5[%c0_18, %c0_19] : memref<1x128xf32, #tpu.memory_space<vmem>>, vector<1x128xf32>
        %25 = vector.shape_cast %24 : vector<1x128xf32> to vector<1x1x128xf32>
        %cst_20 = arith.constant dense<0.000000e+00> : vector<1xf32>
        %26 = vector.multi_reduction <add>, %25, %cst_20 [1, 2] : vector<1x1x128xf32> to vector<1xf32>
        %27 = vector.shape_cast %26 : vector<1xf32> to vector<1x1x1xf32>
        %28 = vector.extract %27[0, 0, 0] : f32 from vector<1x1x1xf32>
        %c0_21 = arith.constant 0 : index
        %c0_22 = arith.constant 0 : index
        %29 = vector.load %arg6[%c0_21, %c0_22] : memref<1x128xf32, #tpu.memory_space<vmem>>, vector<1x128xf32>
        %30 = vector.shape_cast %29 : vector<1x128xf32> to vector<1x1x128xf32>
        %cst_23 = arith.constant dense<0.000000e+00> : vector<1xf32>
        %31 = vector.multi_reduction <add>, %30, %cst_23 [1, 2] : vector<1x1x128xf32> to vector<1xf32>
        %32 = vector.shape_cast %31 : vector<1xf32> to vector<1x1x1xf32>
        %33 = vector.extract %32[0, 0, 0] : f32 from vector<1x1x1xf32>
        %cst_24 = arith.constant 2.048000e+03 : f32
        %34 = arith.divf %28, %cst_24 : f32
        %cst_25 = arith.constant 2.048000e+03 : f32
        %35 = arith.mulf %cst_25, %34 : f32
        %36 = arith.mulf %35, %34 : f32
        %37 = arith.subf %33, %36 : f32
        %cst_26 = arith.constant 2.048000e+03 : f32
        %cst_27 = arith.constant 1.000000e+00 : f32
        %38 = arith.subf %cst_26, %cst_27 : f32
        %39 = arith.divf %37, %38 : f32
        %c0_28 = arith.constant 0 : index
        %40 = memref.load %arg10[%c0_28] : memref<2xf32, #tpu.memory_space<smem>>
        memref.store %34, %arg10[%c0_28] : memref<2xf32, #tpu.memory_space<smem>>
        %41 = arith.addf %39, %cst : f32
        %42 = math.sqrt %41 : f32
        %cst_29 = arith.constant 4.000000e+00 : f32
        %43 = arith.mulf %cst_29, %42 : f32
        %c1 = arith.constant 1 : index
        %44 = memref.load %arg10[%c1] : memref<2xf32, #tpu.memory_space<smem>>
        memref.store %43, %arg10[%c1] : memref<2xf32, #tpu.memory_space<smem>>
      } else {
      }
    } else {
    }
    %c1_i32 = arith.constant 1 : i32
    %3 = arith.cmpi eq, %arg0, %c1_i32 : i32
    %4 = arith.extui %3 : i1 to i32
    %cst_1 = arith.constant 1.000000e-10 : f32
    %c0_i32_2 = arith.constant 0 : i32
    %5 = arith.cmpi ne, %4, %c0_i32_2 : i32
    scf.if %5 {
      %c0 = arith.constant 0 : index
      %c0_3 = arith.constant 0 : index
      %6 = vector.load %arg3[%c0, %c0_3] : memref<16x128xf32, #tpu.memory_space<vmem>>, vector<16x128xf32>
      %c0_4 = arith.constant 0 : index
      %7 = memref.load %arg10[%c0_4] : memref<2xf32, #tpu.memory_space<smem>>
      %c1 = arith.constant 1 : index
      %8 = memref.load %arg10[%c1] : memref<2xf32, #tpu.memory_space<smem>>
      %9 = vector.broadcast %7 : f32 to vector<16x128xf32>
      %10 = arith.subf %6, %9 : vector<16x128xf32>
      %11 = math.absf %10 : vector<16x128xf32>
      %12 = vector.broadcast %8 : f32 to vector<16x128xf32>
      %13 = arith.cmpf olt, %11, %12 : vector<16x128xf32>
      %14 = arith.extui %13 : vector<16x128xi1> to vector<16x128xi32>
      %15 = arith.sitofp %14 : vector<16x128xi32> to vector<16x128xf32>
      %16 = arith.mulf %10, %15 : vector<16x128xf32>
      %c0_5 = arith.constant 0 : index
      %c0_6 = arith.constant 0 : index
      %17 = vector.load %arg7[%c0_5, %c0_6] : memref<1x128xf32, #tpu.memory_space<vmem>>, vector<1x128xf32>
      %cst_7 = arith.constant dense<0.000000e+00> : vector<128xf32>
      %18 = vector.multi_reduction <add>, %15, %cst_7 [0] : vector<16x128xf32> to vector<128xf32>
      %19 = vector.shape_cast %18 : vector<128xf32> to vector<1x128xf32>
      %20 = arith.addf %17, %19 : vector<1x128xf32>
      %c0_8 = arith.constant 0 : index
      %c0_9 = arith.constant 0 : index
      %21 = vector.load %arg7[%c0_8, %c0_9] : memref<1x128xf32, #tpu.memory_space<vmem>>, vector<1x128xf32>
      tpu.vector_store %arg7[%c0_8, %c0_9], %20 {strides = array<i32>} : memref<1x128xf32, #tpu.memory_space<vmem>>, vector<1x128xf32>,
      %c0_10 = arith.constant 0 : index
      %c0_11 = arith.constant 0 : index
      %22 = vector.load %arg8[%c0_10, %c0_11] : memref<1x128xf32, #tpu.memory_space<vmem>>, vector<1x128xf32>
      %cst_12 = arith.constant dense<0.000000e+00> : vector<128xf32>
      %23 = vector.multi_reduction <add>, %16, %cst_12 [0] : vector<16x128xf32> to vector<128xf32>
      %24 = vector.shape_cast %23 : vector<128xf32> to vector<1x128xf32>
      %25 = arith.addf %22, %24 : vector<1x128xf32>
      %c0_13 = arith.constant 0 : index
      %c0_14 = arith.constant 0 : index
      %26 = vector.load %arg8[%c0_13, %c0_14] : memref<1x128xf32, #tpu.memory_space<vmem>>, vector<1x128xf32>
      tpu.vector_store %arg8[%c0_13, %c0_14], %25 {strides = array<i32>} : memref<1x128xf32, #tpu.memory_space<vmem>>, vector<1x128xf32>,
      %c0_15 = arith.constant 0 : index
      %c0_16 = arith.constant 0 : index
      %27 = vector.load %arg9[%c0_15, %c0_16] : memref<1x128xf32, #tpu.memory_space<vmem>>, vector<1x128xf32>
      %28 = arith.mulf %10, %16 : vector<16x128xf32>
      %cst_17 = arith.constant dense<0.000000e+00> : vector<128xf32>
      %29 = vector.multi_reduction <add>, %28, %cst_17 [0] : vector<16x128xf32> to vector<128xf32>
      %30 = vector.shape_cast %29 : vector<128xf32> to vector<1x128xf32>
      %31 = arith.addf %27, %30 : vector<1x128xf32>
      %c0_18 = arith.constant 0 : index
      %c0_19 = arith.constant 0 : index
      %32 = vector.load %arg9[%c0_18, %c0_19] : memref<1x128xf32, #tpu.memory_space<vmem>>, vector<1x128xf32>
      tpu.vector_store %arg9[%c0_18, %c0_19], %31 {strides = array<i32>} : memref<1x128xf32, #tpu.memory_space<vmem>>, vector<1x128xf32>,
      %c0_i32_20 = arith.constant 0 : i32
      %33 = arith.cmpi eq, %arg1, %c0_i32_20 : i32
      %34 = arith.extui %33 : i1 to i32
      %c0_i32_21 = arith.constant 0 : i32
      %35 = arith.cmpi ne, %34, %c0_i32_21 : i32
      scf.if %35 {
        %c0_22 = arith.constant 0 : index
        %36 = memref.load %arg2[%c0_22] : memref<2xf32, #tpu.memory_space<smem>>
        %c1_23 = arith.constant 1 : index
        %37 = memref.load %arg2[%c1_23] : memref<2xf32, #tpu.memory_space<smem>>
        %c0_24 = arith.constant 0 : index
        %c0_25 = arith.constant 0 : index
        %38 = vector.load %arg7[%c0_24, %c0_25] : memref<1x128xf32, #tpu.memory_space<vmem>>, vector<1x128xf32>
        %39 = vector.shape_cast %38 : vector<1x128xf32> to vector<1x1x128xf32>
        %cst_26 = arith.constant dense<0.000000e+00> : vector<1xf32>
        %40 = vector.multi_reduction <add>, %39, %cst_26 [1, 2] : vector<1x1x128xf32> to vector<1xf32>
        %41 = vector.shape_cast %40 : vector<1xf32> to vector<1x1x1xf32>
        %42 = vector.extract %41[0, 0, 0] : f32 from vector<1x1x1xf32>
        %c0_27 = arith.constant 0 : index
        %c0_28 = arith.constant 0 : index
        %43 = vector.load %arg8[%c0_27, %c0_28] : memref<1x128xf32, #tpu.memory_space<vmem>>, vector<1x128xf32>
        %44 = vector.shape_cast %43 : vector<1x128xf32> to vector<1x1x128xf32>
        %cst_29 = arith.constant dense<0.000000e+00> : vector<1xf32>
        %45 = vector.multi_reduction <add>, %44, %cst_29 [1, 2] : vector<1x1x128xf32> to vector<1xf32>
        %46 = vector.shape_cast %45 : vector<1xf32> to vector<1x1x1xf32>
        %47 = vector.extract %46[0, 0, 0] : f32 from vector<1x1x1xf32>
        %48 = arith.divf %47, %42 : f32
        %c0_30 = arith.constant 0 : index
        %c0_31 = arith.constant 0 : index
        %49 = vector.load %arg9[%c0_30, %c0_31] : memref<1x128xf32, #tpu.memory_space<vmem>>, vector<1x128xf32>
        %50 = vector.shape_cast %49 : vector<1x128xf32> to vector<1x1x128xf32>
        %cst_32 = arith.constant dense<0.000000e+00> : vector<1xf32>
        %51 = vector.multi_reduction <add>, %50, %cst_32 [1, 2] : vector<1x1x128xf32> to vector<1xf32>
        %52 = vector.shape_cast %51 : vector<1xf32> to vector<1x1x1xf32>
        %53 = vector.extract %52[0, 0, 0] : f32 from vector<1x1x1xf32>
        %54 = arith.mulf %42, %48 : f32
        %55 = arith.mulf %54, %48 : f32
        %56 = arith.subf %53, %55 : f32
        %cst_33 = arith.constant 1.000000e+00 : f32
        %57 = arith.subf %42, %cst_33 : f32
        %58 = arith.divf %56, %57 : f32
        %59 = arith.addf %58, %cst_1 : f32
        %60 = math.sqrt %59 : f32
        %61 = arith.divf %36, %60 : f32
        %c0_34 = arith.constant 0 : index
        %62 = memref.load %arg10[%c0_34] : memref<2xf32, #tpu.memory_space<smem>>
        %63 = arith.addf %62, %48 : f32
        %64 = arith.mulf %63, %61 : f32
        %65 = arith.subf %37, %64 : f32
        %66 = tpu.iota {dimensions = array<i32: 0>} : vector<8x128xi32>
        %c0_i32_35 = arith.constant 0 : i32
        %67 = vector.broadcast %c0_i32_35 : i32 to vector<8x128xi32>
        %68 = arith.cmpi eq, %66, %67 : vector<8x128xi32>
        %c1_i32_36 = arith.constant 1 : i32
        %69 = vector.broadcast %c1_i32_36 : i32 to vector<8x128xi32>
        %70 = arith.cmpi eq, %66, %69 : vector<8x128xi32>
        %cst_37 = arith.constant 0.000000e+00 : f32
        %71 = vector.broadcast %65 : f32 to vector<8x128xf32>
        %72 = vector.broadcast %cst_37 : f32 to vector<8x128xf32>
        %73 = arith.select %70, %71, %72 : vector<8x128xi1>, vector<8x128xf32>
        %74 = vector.broadcast %61 : f32 to vector<8x128xf32>
        %75 = arith.select %68, %74, %73 : vector<8x128xi1>, vector<8x128xf32>
        %c0_38 = arith.constant 0 : index
        %c0_39 = arith.constant 0 : index
        %76 = vector.load %arg4[%c0_38, %c0_39] : memref<8x128xf32, #tpu.memory_space<vmem>>, vector<8x128xf32>
        tpu.vector_store %arg4[%c0_38, %c0_39], %75 {strides = array<i32>} : memref<8x128xf32, #tpu.memory_space<vmem>>, vector<8x128xf32>,
      } else {
      }
    } else {
    }
    return
  }
  func.func @transform_0(%arg0: i32, %arg1: i32) -> i32 {
    %c0_i32 = arith.constant 0 : i32
    %c0_i32_0 = arith.constant 0 : i32
    return %c0_i32 : i32
  }
  func.func @transform_1(%arg0: i32, %arg1: i32) -> (i32, i32) {
    %c0_i32 = arith.constant 0 : i32
    %c0_i32_0 = arith.constant 0 : i32
    return %arg1, %c0_i32 : i32, i32
  }
  func.func @transform_2(%arg0: i32, %arg1: i32) -> (i32, i32) {
    %c0_i32 = arith.constant 0 : i32
    %c0_i32_0 = arith.constant 0 : i32
    %c0_i32_1 = arith.constant 0 : i32
    return %c0_i32, %c0_i32_0 : i32, i32
  }
}

</mosaic_0001>

<bundles_post_ra>
// kernel: tpu_custom_call.1
= control target key start
LH: loop header
LB: loop body
LE: loop exit
PB: predicated region body
PF: predicated region fallthrough
CT: control target
= control target key end

     0   :  { %7 = vsyncpa [#allocation11], 0  ;;  %s819_s0 = inlined_call_operand.hbm [shape: f32[2], index: 0, kind: input, shape index: {}]   ;;  %s820_s1 = inlined_call_operand.hbm [shape: f32[16,128], index: 1, kind: input, shape index: {}]   ;;  %s821_s2 = inlined_call_operand.hbm [shape: f32[8,128], index: 2, kind: output, shape index: {}]  }
   0x1   :  { %8 = vsyncpa [#allocation9], 0 }
   0x2   :  { %9 = vsyncpa [#allocation10], 0  ;;  %s676_s9 = smov 0   ;;  %s678_s10 = smov 0  }
   0x3   :  { %s680_s11 = smov 0  }
   0x4 LB: > { %s447_s12 = sadd.s32 4294967295, %s652_s11   ;;  %s27_s13 = sadd.s32 1, %s648_s10  ;;  %s652_s11 = sphi %s680_s11, %s15_s11   ;;  %s648_s10 = sphi %s678_s10, %s827_s10   ;;  %s644_s9 = sphi %s676_s9, %s826_s9  }
   0x5   : > { %p29_p0 = scmp.ge.s32.totalorder %s27_s13, 2  ;;  %p448_p1 = scmp.ge.s32.totalorder %s652_s11, 1 }
   0x6   : > { %p100_p2 = scmp.lt.s32.totalorder %s652_s11, 3  ;;  %p703_p4 = scmp.eq.s32.totalorder %s447_s12, 0 }
   0x7   : > { %s829_s13 = smov (%p29_p0, %s27_s13), 0  ;;  %s654_s16 = smov [#allocation12]  }
   0x8   : > { %p697_p3 = pnand %p448_p1, %p100_p2  ;;  %s124_s17 = sshll.u32 %s654_s16, 4  ;;  %s715_s17 = int_to_ptr.vmem [resolvable:$true] %s124_s17 }
   0x9   : > { %s551_s21 = scalar_lea.hbm %s819_s0, 16 }
   0xa   : > { %p497_p5 = pneg %p697_p3  ;;  %p552_p7 = scmp.ne.s32.totalorder %s819_s0, %s551_s21 }
   0xb   : > { %p558_p11 = scmp.lt.u32.totalorder %s551_s21, %s819_s0 }
   0xc   : > { %p711_p6 = pnand %p703_p4, %p497_p5 }
   0xe   : > { %p553_p8 = pneg %p711_p6 }
  0x10   : > { %p554_p9 = pnand %p553_p8, %p552_p7 }
  0x12   : > { %p555_p10 = pneg %p554_p9 }
  0x14   : > { %p560_p12 = pnand %p558_p11, %p555_p10 }
  0x16   : > { %563 = shalt.err (!%p560_p12)
}
  0x17   : > { %s655_s26 = smov [#allocation8]   ;;  %s564_s3 = scalar_lea.hbm %s820_s1, 256 }
  0x18   : > { %500 = dma.hbm_to_smem (!%p711_p6), %s819_s0, 16, %s655_s26, [#allocation11]  }
  0x19   : > { %p565_p13 = scmp.ne.s32.totalorder %s820_s1, %s564_s3  ;;  %p571_p2 = scmp.lt.u32.totalorder %s564_s3, %s820_s1 }
  0x1b   : > { %p567_p0 = pnand %p565_p13, %p553_p8 }
  0x1d   : > { %p568_p1 = pneg %p567_p0 }
  0x1f   : > { %p573_p5 = pnand %p571_p2, %p568_p1 }
  0x21   : > { %576 = shalt.err (!%p573_p5)
}
  0x22   : > { %s577_s8 = scalar_lea.vmem %s715_s17, 256  ;;  %p585_p11 = scmp.lt.s32.totalorder %s715_s17, %s715_s17 }
  0x23   : > { %p578_p7 = scmp.ne.s32.totalorder %s715_s17, %s577_s8  ;;  %p586_p12 = scmp.lt.s32.totalorder %s577_s8, %s577_s8 }
  0x25   : > { %p580_p9 = pnand %p578_p7, %p553_p8  ;;  %p587_p13 = por %p586_p12, %p585_p11 }
  0x27   : > { %p581_p10 = pneg %p580_p9 }
  0x29   : > { %p588_p0 = pnand %p587_p13, %p581_p10 }
  0x2b   : > { %591 = shalt.err (!%p588_p0)
}
  0x2c   : > { %s656_s16 = smov 128   ;;  %s657_s19 = smov 8  }
  0x2d   : > { %503 = dma.hbm_to_vmem [thread:$0]  (!%p711_p6), %s820_s1, 256, %s715_s17, [#allocation9], %s656_s16, %s656_s16, %s657_s19  }
  0x2e   : > { %140 = sbr.rel (%p697_p3) target bundleno = 850 (0x352), region = 28 }
  0x35   : > { %631 = dma.done.wait (%p703_p4), [#allocation11], 16  }
  0x36   : > { %633 = vsyncadd (%p703_p4), [#allocation11], 4294967280 }
  0x37   : > { %635 = dma.done.wait (%p703_p4), [#allocation9], 256  }
  0x38   : > { %637 = vsyncadd (%p703_p4), [#allocation9], 4294967040 }
  0x39   : > { %150 = sfence }
  0x3a   : > { %p454_p8 = scmp.ne.s32.totalorder %s644_s9, 0 }
  0x3b   : > { %v171_v0 = vld [vmem:[#allocation12] sm:$0xff] (!%p454_p8)  ;;  %v172_v1 = vld [vmem:[#allocation12 + $0x8] sm:$0xff] (!%p454_p8)  ;;  %v658_v2 = vmov (!%p454_p8), 0.0   ;;  %vm199_vm0 = vcmask (!%p454_p8), 1040384  }
  0x3c   : > { %161 = sbr.rel (%p454_p8) target bundleno = 370 (0x172), region = 40  ;;  %166 = vst [vmem:[#allocation2] sm:$0x1] (!%p454_p8), %v658_v2  ;;  %168 = vst [vmem:[#allocation4] sm:$0x1] (!%p454_p8), %v658_v2  ;;  %v174_v3 = vadd.f32 (!%p454_p8), %v172_v1, %v171_v0  ;;  %v184_v4 = vmul.f32 (!%p454_p8), %v171_v0, %v171_v0  ;;  %v185_v5 = vmul.f32 (!%p454_p8), %v172_v1, %v172_v1 }
  0x3d   : > { %169 = vst [vmem:[#allocation5] sm:$0x1] (!%p454_p8), %v658_v2  ;;  %170 = vst [vmem:[#allocation6] sm:$0x1] (!%p454_p8), %v658_v2 }
  0x3e   : > { %167 = vst [vmem:[#allocation3] sm:$0x1] (!%p454_p8), %v658_v2  ;;  %v175_v6 = vrot.slane (!%p454_p8), %v174_v3, 4  ;;  %v186_v7 = vadd.f32 (!%p454_p8), %v185_v5, %v184_v4 }
  0x40   : > { %v176_v8 = vadd.f32 (!%p454_p8), %v175_v6, %v174_v3  ;;  %v187_v9 = vrot.slane (!%p454_p8), %v186_v7, 4 }
  0x42   : > { %v177_v10 = vrot.slane (!%p454_p8), %v176_v8, 2  ;;  %v188_v11 = vadd.f32 (!%p454_p8), %v187_v9, %v186_v7 }
  0x43   : > { %v173_v16 = vld [vmem:[#allocation2] sm:$0x1] }
  0x44   : > { %v178_v12 = vadd.f32 %v177_v10, %v176_v8  ;;  %v189_v13 = vrot.slane %v188_v11, 2 }
  0x45   : > { %v183_v19 = vld [vmem:[#allocation3] sm:$0x1] }
  0x46   : > { %v179_v14 = vrot.slane %v178_v12, 1  ;;  %v190_v15 = vadd.f32 %v189_v13, %v188_v11 }
  0x48   : > { %v180_v17 = vadd.f32 %v179_v14, %v178_v12  ;;  %v191_v18 = vrot.slane %v190_v15, 1 }
  0x4a   : > { %v181_v20 = vadd.f32 %v180_v17, %v173_v16  ;;  %v192_v21 = vadd.f32 %v191_v18, %v190_v15 }
  0x4c   : > { %182 = vst [vmem:[#allocation2] sm:$0x1] %v181_v20  ;;  %v193_v22 = vadd.f32 %v192_v21, %v183_v19 }
  0x4e   : > { %194 = vst [vmem:[#allocation3] sm:$0x1] %v193_v22 }
  0x53   : > { %v198_v23 = vld [vmem:[#allocation2] sm:$0x1] }
  0x54   : > { %v200_v24 = vsel %vm199_vm0, %v198_v23, 0.0 }
  0x55   : > { %201 = vadd.xlane.f32.xlu0 %v200_v24  ;;  %v210_v25 = vld [vmem:[#allocation3] sm:$0x1] }
  0x56   : > { %v211_v26 = vsel %vm199_vm0, %v210_v25, 0.0 }
  0x59   : > { %212 = vadd.xlane.f32.xlu0 %v211_v26 }
  0xe2   : > { %v202_v27 = vpop.xlane.xlu0 %201 }
  0xe3   : > { %v203_v28 = vrot.slane %v202_v27, 4 }
  0xe5   : > { %v204_v29 = vadd.f32 %v203_v28, %v202_v27 }
  0xe6   : > { %v213_v30 = vpop.xlane.xlu0 %212 }
  0xe7   : > { %v205_v31 = vrot.slane %v204_v29, 2  ;;  %v214_v32 = vrot.slane %v213_v30, 4 }
  0xe9   : > { %v215_v33 = vadd.f32 %v214_v32, %v213_v30  ;;  %v206_v34 = vadd.f32 %v205_v31, %v204_v29 }
  0xeb   : > { %v216_v35 = vrot.slane %v215_v33, 2  ;;  %v207_v36 = vrot.slane %v206_v34, 1 }
  0xed   : > { %v217_v37 = vadd.f32 %v216_v35, %v215_v33  ;;  %v208_v38 = vadd.f32 %v207_v36, %v206_v34 }
  0xef   : > { %465 = vpush %v208_v38  ;;  %v218_v39 = vrot.slane %v217_v37, 1 }
  0xf1   : > { %v219_v40 = vadd.f32 %v218_v39, %v217_v37 }
  0xf3   : > { %467 = vpush %v219_v40 }
 0x120   : > { %s466_s14 = spop %465 }
 0x121   : > { %s223_s15 = smul.f32 0.00048828125, %s466_s14 }
 0x123   : > { %231 = sst [smem:[#allocation7]] %s223_s15  ;;  %s224_s17 = smul.f32 2048.0, %s223_s15 }
 0x124   : > { %s468_s22 = spop %467 }
 0x125   : > { %s225_s18 = smul.f32 %s224_s17, %s223_s15 }
 0x127   : > { %s226_s23 = ssub.f32 %s468_s22, %s225_s18 }
 0x129   : > { %s229_s24 = smul.f32 0.0004885198, %s226_s23 }
 0x12b   : > { %s232_s25 = sadd.f32 1e-10, %s229_s24 }
 0x12d   : > { %v233_v41 = vstv %s232_s25 }
 0x12e   : > { %541 = vrsqrt.f32 %v233_v41  ;;  %vm236_vm1 = vcmp.eq.f32.partialorder %v233_v41, inf  ;;  %v239_v44 = vand.u32 2147483648, %v233_v41  ;;  %vm238_vm2 = vcmp.eq.f32.partialorder %v233_v41, 0.0 }
 0x138   : > { %v542_v42 = vpop.eup %541 }
 0x139   : > { %v235_v43 = vmul.f32 %v542_v42, %v233_v41 }
 0x13b   : > { %v237_v45 = vsel %vm236_vm1, %v233_v41, %v235_v43 }
 0x13c   : > { %v240_v46 = vsel %vm238_vm2, %v239_v44, %v237_v45 }
 0x13d   : > { %469 = vpush %v240_v46 }
 0x16e   : > { %s470_s26 = spop %469 }
 0x16f   : > { %s242_s27 = smul.f32 4.0, %s470_s26 }
 0x171   : > { %244 = sst [smem:[#allocation7 + $0x1]] %s242_s27 }
 0x172 PF: > { %p455_p3 = scmp.ne.s32.totalorder %s644_s9, 1 }
 0x173   : > { %s773_s28 = sld [smem:[#allocation7]] (!%p455_p3)  ;;  %s456_s29 = sld [smem:[#allocation7 + $0x1]] (!%p455_p3)  ;;  %v249_v47 = vld [vmem:[#allocation12] sm:$0xff] (!%p455_p3)  ;;  %v250_v48 = vld [vmem:[#allocation12 + $0x8] sm:$0xff] (!%p455_p3)  ;;  %v659_v55 = vmov (!%p455_p3), 0.0   ;;  %vm306_vm5 = vcmask (!%p455_p3), 1040384  }
 0x174   : > { %248 = sbr.rel (%p455_p3) target bundleno = 825 (0x339), region = 52  ;;  %v267_v13 = vld [vmem:[#allocation4] sm:$0x1] (!%p455_p3)  ;;  %v277_v17 = vld [vmem:[#allocation5] sm:$0x1] (!%p455_p3)  ;;  %s303_s15 = sld [smem:[#allocation8]] (!%p455_p3) }
 0x175   : > { %v287_v21 = vld [vmem:[#allocation6] sm:$0x1] (!%p455_p3)  ;;  %s459_s17 = sld [smem:[#allocation8 + $0x1]] (!%p455_p3) }
 0x179   : > { %v253_v49 = vstv (!%p455_p3), %s773_s28  ;;  %v258_v52 = vstv (!%p455_p3), %s456_s29 }
 0x17a   : > { %v254_v50 = vsub.f32 (!%p455_p3), %v249_v47, %v253_v49  ;;  %v255_v51 = vsub.f32 (!%p455_p3), %v250_v48, %v253_v49 }
 0x17c   : > { %v256_v53 = vand.u32 2147483647, %v254_v50  ;;  %v257_v54 = vand.u32 2147483647, %v255_v51 }
 0x17e   : > { %vm259_vm3 = vcmp.lt.f32.partialorder %v256_v53, %v258_v52  ;;  %vm260_vm4 = vcmp.lt.f32.partialorder %v257_v54, %v258_v52 }
 0x17f   : > { %v457_v56 = vsel %vm259_vm3, 1.0, %v659_v55  ;;  %v458_v57 = vsel %vm260_vm4, 1.0, %v659_v55 }
 0x180   : > { %v266_v58 = vmul.f32 %v458_v57, %v255_v51  ;;  %v268_v59 = vadd.f32 %v458_v57, %v457_v56  ;;  %v265_v60 = vmul.f32 %v457_v56, %v254_v50 }
 0x182   : > { %v269_v61 = vrot.slane %v268_v59, 4  ;;  %v278_v62 = vadd.f32 %v266_v58, %v265_v60  ;;  %v288_v63 = vmul.f32 %v265_v60, %v254_v50  ;;  %v289_v0 = vmul.f32 %v266_v58, %v255_v51 }
 0x184   : > { %v270_v1 = vadd.f32 %v269_v61, %v268_v59  ;;  %v279_v2 = vrot.slane %v278_v62, 4  ;;  %v290_v3 = vadd.f32 %v289_v0, %v288_v63  ;;  %v369_v0 = vlaneseq }
 0x186   : > { %v271_v4 = vrot.slane %v270_v1, 2  ;;  %v280_v5 = vadd.f32 %v279_v2, %v278_v62  ;;  %v291_v6 = vrot.slane %v290_v3, 4 }
 0x188   : > { %v272_v7 = vadd.f32 %v271_v4, %v270_v1  ;;  %v281_v8 = vrot.slane %v280_v5, 2  ;;  %v292_v9 = vadd.f32 %v291_v6, %v290_v3  ;;  %v370_v1 = vshrl.u32 %v369_v0, 7 }
 0x18a   : > { %v273_v10 = vrot.slane %v272_v7, 1  ;;  %v282_v11 = vadd.f32 %v281_v8, %v280_v5  ;;  %v293_v12 = vrot.slane %v292_v9, 2  ;;  %vm372_vm8 = vcmp.eq.s32.totalorder %v370_v1, 1 }
 0x18b   : > { %vm371_vm9 = vcmp.eq.s32.totalorder %v370_v1, 0 }
 0x18c   : > { %v274_v14 = vadd.f32 %v273_v10, %v272_v7  ;;  %v283_v15 = vrot.slane %v282_v11, 1  ;;  %v294_v16 = vadd.f32 %v293_v12, %v292_v9 }
 0x18e   : > { %v275_v18 = vadd.f32 %v274_v14, %v267_v13  ;;  %v284_v19 = vadd.f32 %v283_v15, %v282_v11  ;;  %v295_v20 = vrot.slane %v294_v16, 1 }
 0x190   : > { %276 = vst [vmem:[#allocation4] sm:$0x1] %v275_v18  ;;  %v285_v22 = vadd.f32 %v284_v19, %v277_v17  ;;  %v296_v23 = vadd.f32 %v295_v20, %v294_v16 }
 0x192   : > { %286 = vst [vmem:[#allocation5] sm:$0x1] %v285_v22  ;;  %v297_v24 = vadd.f32 %v296_v23, %v287_v21 }
 0x194   : > { %298 = vst [vmem:[#allocation6] sm:$0x1] %v297_v24 }
 0x197   : > { %v305_v25 = vld [vmem:[#allocation4] sm:$0x1] }
 0x198   : > { %v307_v26 = vsel %vm306_vm5, %v305_v25, 0.0 }
 0x199   : > { %308 = vadd.xlane.f32.xlu0 %v307_v26  ;;  %v317_v27 = vld [vmem:[#allocation5] sm:$0x1] }
 0x19a   : > { %v318_v28 = vsel %vm306_vm5, %v317_v27, 0.0 }
 0x19b   : > { %v332_v29 = vld [vmem:[#allocation6] sm:$0x1] }
 0x19c   : > { %v333_v30 = vsel %vm306_vm5, %v332_v29, 0.0 }
 0x19d   : > { %319 = vadd.xlane.f32.xlu0 %v318_v28  ;;  %334 = vadd.xlane.f32.xlu1 %v333_v30 }
 0x226   : > { %v309_v31 = vpop.xlane.xlu0 %308 }
 0x227   : > { %v310_v32 = vrot.slane %v309_v31, 4 }
 0x229   : > { %v311_v33 = vadd.f32 %v310_v32, %v309_v31 }
 0x22a   : > { %v320_v34 = vpop.xlane.xlu0 %319  ;;  %v335_v45 = vpop.xlane.xlu1 %334 }
 0x22b   : > { %v312_v35 = vrot.slane %v311_v33, 2  ;;  %v321_v36 = vrot.slane %v320_v34, 4  ;;  %v336_v46 = vrot.slane %v335_v45, 4 }
 0x22d   : > { %v313_v37 = vadd.f32 %v312_v35, %v311_v33  ;;  %v322_v38 = vadd.f32 %v321_v36, %v320_v34  ;;  %v337_v47 = vadd.f32 %v336_v46, %v335_v45 }
 0x22f   : > { %v314_v39 = vrot.slane %v313_v37, 1  ;;  %v323_v40 = vrot.slane %v322_v38, 2  ;;  %v338_v48 = vrot.slane %v337_v47, 2 }
 0x231   : > { %v315_v41 = vadd.f32 %v314_v39, %v313_v37  ;;  %v324_v42 = vadd.f32 %v323_v40, %v322_v38  ;;  %v339_v50 = vadd.f32 %v338_v48, %v337_v47 }
 0x233   : > { %471 = vpush %v315_v41  ;;  %v325_v43 = vrot.slane %v324_v42, 1  ;;  %v340_v52 = vrot.slane %v339_v50, 1 }
 0x235   : > { %v326_v44 = vadd.f32 %v325_v43, %v324_v42  ;;  %v341_v53 = vadd.f32 %v340_v52, %v339_v50 }
 0x237   : > { %473 = vpush %v326_v44 }
 0x264   : > { %s472_s9 = spop %471 }
 0x265   : > { %v328_v49 = vstv %s472_s9  ;;  %s460_s30 = sadd.f32 -1.0, %s472_s9 }
 0x266   : > { %543 = vrcp.f32 %v328_v49 }
 0x267   : > { %v347_v51 = vstv %s460_s30 }
 0x268   : > { %545 = vrcp.f32 %v347_v51  ;;  %s474_s3 = spop %473 }
 0x270   : > { %v544_v54 = vpop.eup %543 }
 0x271   : > { %475 = vpush %v544_v54 }
 0x272   : > { %v546_v55 = vpop.eup %545  ;;  %477 = vpush %v341_v53 }
 0x273   : > { %479 = vpush %v546_v55 }
 0x2a2   : > { %s476_s4 = spop %475 }
 0x2a3   : > { %s776_s5 = smul.f32 %s476_s4, %s474_s3  ;;  %s478_s8 = spop %477 }
 0x2a4   : > { %s480_s19 = spop %479 }
 0x2a5   : > { %s343_s6 = smul.f32 %s472_s9, %s776_s5  ;;  %s366_s23 = sadd.f32 %s776_s5, %s773_s28 }
 0x2a7   : > { %s344_s7 = smul.f32 %s343_s6, %s776_s5 }
 0x2a9   : > { %s345_s16 = ssub.f32 %s478_s8, %s344_s7 }
 0x2ab   : > { %s350_s20 = smul.f32 %s480_s19, %s345_s16 }
 0x2ad   : > { %s351_s21 = sadd.f32 1e-10, %s350_s20 }
 0x2af   : > { %v352_v56 = vstv %s351_s21 }
 0x2b0   : > { %547 = vrsqrt.f32 %v352_v56  ;;  %vm355_vm6 = vcmp.eq.f32.partialorder %v352_v56, inf  ;;  %v358_v59 = vand.u32 2147483648, %v352_v56  ;;  %vm357_vm7 = vcmp.eq.f32.partialorder %v352_v56, 0.0 }
 0x2ba   : > { %v548_v57 = vpop.eup %547 }
 0x2bb   : > { %v354_v58 = vmul.f32 %v548_v57, %v352_v56 }
 0x2bd   : > { %v356_v60 = vsel %vm355_vm6, %v352_v56, %v354_v58 }
 0x2be   : > { %v359_v61 = vsel %vm357_vm7, %v358_v59, %v356_v60 }
 0x2bf   : > { %481 = vpush %v359_v61 }
 0x2f0   : > { %s482_s14 = spop %481 }
 0x2f1   : > { %v361_v62 = vstv %s482_s14 }
 0x2f2   : > { %549 = vrcp.f32 %v361_v62 }
 0x2fc   : > { %v550_v63 = vpop.eup %549 }
 0x2fd   : > { %483 = vpush %v550_v63 }
 0x32e   : > { %s484_s18 = spop %483 }
 0x32f   : > { %s364_s22 = smul.f32 %s484_s18, %s303_s15 }
 0x331   : > { %s367_s24 = smul.f32 %s366_s23, %s364_s22  ;;  %v375_v4 = vstv %s364_s22 }
 0x333   : > { %s368_s25 = ssub.f32 %s459_s17, %s367_s24 }
 0x335   : > { %v373_v2 = vstv %s368_s25 }
 0x336   : > { %v374_v3 = vsel %vm372_vm8, %v373_v2, 0.0 }
 0x337   : > { %v376_v5 = vsel %vm371_vm9, %v375_v4, %v374_v3 }
 0x338   : > { %377 = vst [vmem:[#allocation13] sm:$0xff] %v376_v5 }
 0x339 PF: > { %p784_p4 = scmp.eq.s32.totalorder %s447_s12, 1  ;;  %s660_s27 = smov [#allocation13]  }
 0x33a   : > { %s385_s28 = sshll.u32 %s660_s27, 4  ;;  %s386_s28 = int_to_ptr.vmem [resolvable:$true] %s385_s28 }
 0x33b   : > { %s592_s29 = scalar_lea.vmem %s386_s28, 128  ;;  %p599_p5 = scmp.lt.s32.totalorder %s386_s28, %s386_s28 }
 0x33c   : > { %p593_p6 = scmp.ne.s32.totalorder %s386_s28, %s592_s29  ;;  %p600_p7 = scmp.lt.s32.totalorder %s592_s29, %s592_s29 }
 0x33e   : > { %p594_p1 = pnand %p593_p6, %p784_p4  ;;  %p601_p9 = por %p600_p7, %p599_p5 }
 0x340   : > { %p595_p2 = pneg %p594_p1 }
 0x342   : > { %p602_p10 = pnand %p601_p9, %p595_p2 }
 0x344   : > { %605 = shalt.err (!%p602_p10)
}
 0x345   : > { %s606_s12 = scalar_lea.hbm %s821_s2, 128 }
 0x346   : > { %p607_p11 = scmp.ne.s32.totalorder %s821_s2, %s606_s12  ;;  %p612_p0 = scmp.lt.u32.totalorder %s606_s12, %s821_s2 }
 0x348   : > { %p608_p12 = pnand %p607_p11, %p784_p4 }
 0x34a   : > { %p609_p13 = pneg %p608_p12 }
 0x34c   : > { %p614_p8 = pnand %p612_p0, %p609_p13 }
 0x34e   : > { %617 = shalt.err (!%p614_p8)
}
 0x34f   : > { %494 = dma.vmem_to_hbm [thread:$0]  (%p784_p4), %s386_s28, 128, %s821_s2, [#allocation10]  }
 0x350   : > { %639 = dma.done.wait (%p784_p4), [#allocation10], 128  }
 0x351   : > { %641 = vsyncadd (%p784_p4), [#allocation10], 4294967168 }
 0x352 PF: > { %s15_s11 = sadd.s32 1, %s652_s11   ;;  %s826_s9 = smov %s648_s10 }
 0x353   : > { %p12_p3 = scmp.ge.s32.totalorder %s15_s11, 4   ;;  %s827_s10 = smov %s829_s13 }
 0x355   :  { %14 = sbr.rel (!%p12_p3) target bundleno = 4 (0x4), region = 85 }
 0x35c   :  { %398 = vsyncpa [#allocation9], 1 }
 0x35d   :  { %400 = vsyncpa [#allocation9 + $0x1], 1 }
 0x35e   :  { %401 = vsyncpa [#allocation10], 1 }
 0x35f   :  { %403 = vsyncpa [#allocation10 + $0x1], 1 }
 0x360   :  { %404 = vsyncpa [#allocation11], 1 }
 0x361   :  { %406 = vsyncpa [#allocation11 + $0x1], 1 }

</bundles_post_ra>
